<compile_context>
chip_gen: v5e
topology: v5e:2x2
jax: 0.10.0
libtpu: 0.0.40
codegen_flags: <defaults>
</compile_context>

<pallas_src>
import functools
import math

import jax
import jax.numpy as jnp
from jax.experimental import pallas as pl
from jax.experimental.pallas import tpu as pltpu


# ---------------------------------------------------------------------------
# Kernel
# ---------------------------------------------------------------------------
def encoder_layer_kernel(
    x_ref,            # (NB, L, D) f32 activations, batch-major
    wqkv_ref,         # (D, 3D)  bf16 fused [Wq*scale | Wk | Wv], (in, out) layout
    wo_ref,           # (D, D)   bf16 output projection, (in, out) layout
    g1_ref, be1_ref,  # (1, D) f32 LayerNorm 1 gamma / beta
    w1_ref, b1_ref,   # (D, F) bf16 / (1, F) f32  FFN fc1
    w2_ref, b2_ref,   # (F, D) bf16 / (1, D) f32  FFN fc2
    g2_ref, be2_ref,  # (1, D) f32 LayerNorm 2 gamma / beta
    o_ref,            # (NB, L, D) f32 output
    *, nhead: int, d_k: int, eps: float = 1e-5,
):
    nb, L, D = x_ref.shape
    R = nb * L

    # (NB, L, D) -> (NB*L, D): sublane-aligned row tile; f32 kept for residual/LN.
    x = x_ref[...].reshape(R, D)
    x_bf = x.astype(jnp.bfloat16)

    # Fused QKV projection: one wide MXU matmul, f32 accumulation.  The q
    # columns carry the 1/sqrt(d_k) scale (folded in at pack time).
    qkv = jnp.dot(x_bf, wqkv_ref[...], preferred_element_type=jnp.float32)  # (R, 3D)

    # Head split: one lane slice per head (H slices, not NB*H), one stack and a
    # leading-dim reshape.  Batch index of head-batched operands is h*NB + b.
    # Relayouts happen in f32 (well-supported layouts); cast to bf16 at the end.
    def split_heads(col0):
        parts = [qkv[:, col0 + h * d_k: col0 + (h + 1) * d_k] for h in range(nhead)]
        stacked = jnp.stack(parts, axis=0)                     # (H, R, d_k) f32
        return stacked.reshape(nhead * nb, L, d_k).astype(jnp.bfloat16)

    qh = split_heads(0)
    kh = split_heads(D)
    vh = split_heads(2 * D)

    # Scores + softmax (f32 math, EUP approx reciprocal) + probs @ V, batched
    # over NB*H heads.  Scale already folded into q.
    s = jnp.einsum("bqd,bkd->bqk", qh, kh, preferred_element_type=jnp.float32)
    s = s - jnp.max(s, axis=-1, keepdims=True)
    p = jnp.exp(s)
    p = p * pl.reciprocal(jnp.sum(p, axis=-1, keepdims=True), approx=True)
    ctx = jnp.einsum("bqk,bkd->bqd", p.astype(jnp.bfloat16), vh,
                     preferred_element_type=jnp.float32)       # (NB*H, L, d_k) f32

    # Reassemble heads to (R, D) rows (lane order [h0 | h1 | ...], matching the
    # PyTorch head concatenation) and run ONE full-width output projection so
    # the MXU contracts over K=D instead of K=d_k.
    ctx3 = ctx.reshape(nhead, R, d_k)                          # rows back in (b, l) order
    ctx_rows = jnp.concatenate([ctx3[h] for h in range(nhead)], axis=-1)   # (R, D) f32
    att = jnp.dot(ctx_rows.astype(jnp.bfloat16), wo_ref[...],
                  preferred_element_type=jnp.float32)

    # TODO(synk): dropout treated as identity (eval semantics); src_mask /
    #             key_padding_mask not implemented (None path only).

    # Residual + LayerNorm 1 (f32).
    y = x + att
    mu = jnp.mean(y, axis=-1, keepdims=True)
    var = jnp.mean((y - mu) ** 2, axis=-1, keepdims=True)
    y = (y - mu) * jax.lax.rsqrt(var + eps) * g1_ref[...] + be1_ref[...]

    # FFN: fc2(relu(fc1(y))), bf16 matmul operands with f32 accumulation.
    h1 = jnp.dot(y.astype(jnp.bfloat16), w1_ref[...],
                 preferred_element_type=jnp.float32) + b1_ref[...]
    h1 = jnp.maximum(h1, 0.0)
    f = jnp.dot(h1.astype(jnp.bfloat16), w2_ref[...],
                preferred_element_type=jnp.float32) + b2_ref[...]

    # Residual + LayerNorm 2 (f32).
    z = y + f
    mu2 = jnp.mean(z, axis=-1, keepdims=True)
    var2 = jnp.mean((z - mu2) ** 2, axis=-1, keepdims=True)
    z = (z - mu2) * jax.lax.rsqrt(var2 + eps) * g2_ref[...] + be2_ref[...]

    o_ref[...] = z.reshape(nb, L, D)


# ---------------------------------------------------------------------------
# VMEM sizing / block selection
# ---------------------------------------------------------------------------
def _weight_vmem_bytes(D, F):
    # bf16 matmul weights + small f32 vectors.
    return 2 * (3 * D * D + D * D + 2 * D * F) + 4 * (4 * D + F)


def _step_vmem_bytes(bb, L, D, F, nhead):
    """Rough per-grid-step VMEM footprint (activation blocks + intermediates)."""
    r = bb * L
    b = 0
    b += 2 * 2 * r * D * 4                  # double-buffered f32 in/out blocks
    b += r * 3 * D * (4 + 3 * 2)            # qkv f32 + head-split bf16 copies
    b += bb * nhead * L * L * (4 + 4 + 2)   # scores f32, probs f32, probs bf16
    b += r * D * (4 + 4 + 2 + 4 + 2)        # ctx, ctx_rows, att, y (+ bf16 casts)
    b += r * F * (4 + 2)                    # h1 f32 + bf16
    b += r * D * (4 + 4)                    # ffn out + LN2 temporaries
    return b


def _choose_batch_block(N, L, D, F, nhead, budget_bytes=48 << 20):
    """Largest batch chunk whose working set fits the VMEM budget, preferring
    >= 4 grid steps (2 v7x TensorCores x pipeline depth) and row tiles that are
    multiples of 256 (v6e/v7x MXU feed)."""
    divisors = [d for d in range(1, N + 1) if N % d == 0]
    wbytes = _weight_vmem_bytes(D, F)
    fitting = [d for d in divisors
               if _step_vmem_bytes(d, L, D, F, nhead) + wbytes <= budget_bytes]
    if not fitting:
        # TODO(synk): KV-block (flash-style) and F-axis tiling for shapes where
        #             even a single batch element does not fit the budget.
        return 1
    preferences = (
        lambda d: N // d >= 4 and (d * L) % 256 == 0,
        lambda d: N // d >= 2 and (d * L) % 256 == 0,
        lambda d: N // d >= 2,
        lambda d: True,
    )
    for pred in preferences:
        cands = [d for d in fitting if pred(d)]
        if cands:
            return max(cands)
    return max(fitting)


# ---------------------------------------------------------------------------
# One-time weight packing (hoisted out of the per-call path)
# ---------------------------------------------------------------------------
def pack_params(params, *, nhead):
    """Fuse QKV (folding 1/sqrt(d_k) into the q columns), transpose matmul
    weights to (in, out) layout and cast them to bf16.  Call once; reuse the
    result for every forward call."""
    D = params["wq"].shape[0]
    F = params["w1"].shape[0]
    d_k = D // nhead
    scale = 1.0 / math.sqrt(d_k)
    wqkv = jnp.concatenate(
        [params["wq"].T * scale, params["wk"].T, params["wv"].T], axis=1
    ).astype(jnp.bfloat16)                                      # (D, 3D)
    return {
        "wqkv": wqkv,
        "wo": params["wo"].T.astype(jnp.bfloat16),              # (D, D)
        "w1": params["w1"].T.astype(jnp.bfloat16),              # (D, F)
        "b1": params["b1"].reshape(1, F).astype(jnp.float32),
        "w2": params["w2"].T.astype(jnp.bfloat16),              # (F, D)
        "b2": params["b2"].reshape(1, D).astype(jnp.float32),
        "ln1_g": params["ln1_g"].reshape(1, D).astype(jnp.float32),
        "ln1_b": params["ln1_b"].reshape(1, D).astype(jnp.float32),
        "ln2_g": params["ln2_g"].reshape(1, D).astype(jnp.float32),
        "ln2_b": params["ln2_b"].reshape(1, D).astype(jnp.float32),
    }


# ---------------------------------------------------------------------------
# Feature probe: single-buffered grid-invariant inputs (pl.Buffered(1))
# ---------------------------------------------------------------------------
@functools.lru_cache(maxsize=None)
def _single_buffer_weights_supported():
    """True iff this jax/Mosaic build honors pipeline_mode=pl.Buffered(1)
    (halves the weight VMEM footprint; important on v7x's 64 MiB VMEM)."""
    try:
        def _copy(x_ref, o_ref):
            o_ref[...] = x_ref[...]
        fn = pl.pallas_call(
            _copy,
            out_shape=jax.ShapeDtypeStruct((8, 128), jnp.float32),
            grid=(1,),
            in_specs=[pl.BlockSpec((8, 128), lambda i: (0, 0),
                                   pipeline_mode=pl.Buffered(1))],
            out_specs=pl.BlockSpec((8, 128), lambda i: (0, 0)),
        )
        jax.block_until_ready(fn(jnp.zeros((8, 128), jnp.float32)))
        return True
    except Exception:
        return False


# ---------------------------------------------------------------------------
# Forward wrapper
# ---------------------------------------------------------------------------
@functools.partial(
    jax.jit, static_argnames=("nhead", "batch_block", "single_buffer_weights"))
def _encoder_layer_fwd(src, packed, *, nhead, batch_block, single_buffer_weights):
    L, N, D = src.shape
    assert D % nhead == 0
    d_k = D // nhead
    F = packed["w1"].shape[1]

    if batch_block is None:
        batch_block = _choose_batch_block(N, L, D, F, nhead)
    assert N % batch_block == 0
    num_steps = N // batch_block

    # Batch-major activations (f32 kept for residual / LayerNorm accuracy).
    # TODO(synk): when batch_block >= 8, read (L, batch_block, D) blocks straight
    #             from the (L, N, D) input (and mirror for the output) to save
    #             the two HBM transpose round trips; at small batch blocks the
    #             short sublane dim of such blocks costs more than the transpose.
    x_nld = jnp.transpose(src, (1, 0, 2)).astype(jnp.float32)

    weight_mode = pl.Buffered(1) if single_buffer_weights else None

    def wspec(shape):   # grid-invariant matmul weights (single-buffered if possible)
        idx = lambda i: (0,) * len(shape)
        if weight_mode is not None:
            return pl.BlockSpec(shape, idx, pipeline_mode=weight_mode)
        return pl.BlockSpec(shape, idx)

    def cspec(shape):   # small grid-invariant vectors
        return pl.BlockSpec(shape, lambda i: (0,) * len(shape))

    # Advisory cost estimate so XLA can overlap surrounding ops with the kernel.
    flops = 2 * N * L * (4 * D * D + 2 * D * F) + 4 * N * nhead * L * L * d_k
    cost = pl.CostEstimate(
        flops=int(flops),
        transcendentals=int(N * nhead * L * L),
        bytes_accessed=int(2 * N * L * D * 4 + _weight_vmem_bytes(D, F)),
    )

    # Explicit scoped-VMEM limit derived from the estimated working set
    # (defaults are 16/32 MiB on v5e/v6e, far below physical).
    est = _step_vmem_bytes(batch_block, L, D, F, nhead) + _weight_vmem_bytes(D, F)
    vmem_limit = int(min(100 << 20, max(32 << 20, (3 * est) // 2)))

    kernel = functools.partial(encoder_layer_kernel, nhead=nhead, d_k=d_k)

    out_nld = pl.pallas_call(
        kernel,
        out_shape=jax.ShapeDtypeStruct((N, L, D), jnp.float32),
        grid=(num_steps,),
        in_specs=[
            pl.BlockSpec((batch_block, L, D), lambda i: (i, 0, 0)),   # x
            wspec((D, 3 * D)),                 # fused Wqkv (scale folded into q)
            wspec((D, D)),                     # Wo
            cspec((1, D)), cspec((1, D)),      # LN1 gamma / beta
            wspec((D, F)), cspec((1, F)),      # fc1 w / b
            wspec((F, D)), cspec((1, D)),      # fc2 w / b
            cspec((1, D)), cspec((1, D)),      # LN2 gamma / beta
        ],
        out_specs=pl.BlockSpec((batch_block, L, D), lambda i: (i, 0, 0)),
        compiler_params=pltpu.CompilerParams(
            dimension_semantics=("parallel",),
            vmem_limit_bytes=vmem_limit,
        ),
        cost_estimate=cost,
    )(x_nld, packed["wqkv"], packed["wo"],
      packed["ln1_g"], packed["ln1_b"],
      packed["w1"], packed["b1"], packed["w2"], packed["b2"],
      packed["ln2_g"], packed["ln2_b"])

    return jnp.transpose(out_nld, (1, 0, 2))   # back to (L, N, D)


def transformer_encoder_layer(src, packed, *, nhead, batch_block=None):
    """src: (L, N, D) float32 (PyTorch layout); packed: output of pack_params.
    Returns (L, N, D) float32."""
    return _encoder_layer_fwd(
        src, packed, nhead=nhead, batch_block=batch_block,
        single_buffer_weights=_single_buffer_weights_supported())


# ---------------------------------------------------------------------------
# Pure-JAX reference (mirrors the PyTorch forward, eval mode) + init
# ---------------------------------------------------------------------------
def reference_encoder_layer(src, params, *, nhead):
    L, N, D = src.shape
    d_k = D // nhead
    x = src.astype(jnp.float32)

    def linear(v, w, b=None):
        y = jnp.einsum("lnd,od->lno", v, w)
        return y if b is None else y + b

    q = linear(x, params["wq"]).reshape(L, N, nhead, d_k)
    k = linear(x, params["wk"]).reshape(L, N, nhead, d_k)
    v = linear(x, params["wv"]).reshape(L, N, nhead, d_k)
    q = jnp.transpose(q, (1, 2, 0, 3))
    k = jnp.transpose(k, (1, 2, 0, 3))
    v = jnp.transpose(v, (1, 2, 0, 3))
    scores = jnp.einsum("nhsd,nhtd->nhst", q, k) / math.sqrt(d_k)
    weights = jax.nn.softmax(scores, axis=-1)
    att = jnp.einsum("nhst,nhtd->nhsd", weights, v)
    att = jnp.transpose(att, (2, 0, 1, 3)).reshape(L, N, D)
    att = linear(att, params["wo"])

    def layer_norm(y, g, b, eps=1e-5):
        mu = jnp.mean(y, axis=-1, keepdims=True)
        var = jnp.mean((y - mu) ** 2, axis=-1, keepdims=True)
        return (y - mu) / jnp.sqrt(var + eps) * g + b

    y = layer_norm(x + att, params["ln1_g"], params["ln1_b"])
    h = jnp.maximum(linear(y, params["w1"], params["b1"]), 0.0)
    f = linear(h, params["w2"], params["b2"])
    return layer_norm(y + f, params["ln2_g"], params["ln2_b"])


def init_params(key, d_model, nhead, dim_feedforward):
    ks = jax.random.split(key, 8)
    s = 0.05
    return {
        "wq": s * jax.random.normal(ks[0], (d_model, d_model), jnp.float32),
        "wk": s * jax.random.normal(ks[1], (d_model, d_model), jnp.float32),
        "wv": s * jax.random.normal(ks[2], (d_model, d_model), jnp.float32),
        "wo": s * jax.random.normal(ks[3], (d_model, d_model), jnp.float32),
        "ln1_g": jnp.ones((d_model,), jnp.float32),
        "ln1_b": jnp.zeros((d_model,), jnp.float32),
        "w1": s * jax.random.normal(ks[4], (dim_feedforward, d_model), jnp.float32),
        "b1": s * jax.random.normal(ks[5], (dim_feedforward,), jnp.float32),
        "w2": s * jax.random.normal(ks[6], (d_model, dim_feedforward), jnp.float32),
        "b2": s * jax.random.normal(ks[7], (d_model,), jnp.float32),
        "ln2_g": jnp.ones((d_model,), jnp.float32),
        "ln2_b": jnp.zeros((d_model,), jnp.float32),
    }


if __name__ == "__main__":
    L, N, d_model = 8, 2, 32
    nhead, dim_feedforward = 4, 64

    key = jax.random.PRNGKey(0)
    k_src, k_par = jax.random.split(key)
    src = jax.random.normal(k_src, (L, N, d_model), jnp.float32)
    params = init_params(k_par, d_model, nhead, dim_feedforward)

    packed = pack_params(params, nhead=nhead)          # one-time weight packing
    out = transformer_encoder_layer(src, packed, nhead=nhead)
    out = jax.block_until_ready(out)

    ref = reference_encoder_layer(src, params, nhead=nhead)
    assert out.shape == (L, N, d_model)
    max_err = float(jnp.max(jnp.abs(out - ref)))
    # bf16 matmul operands (f32 accumulation) + approx reciprocal -> loose tol.
    assert jnp.allclose(out, ref, atol=2e-2, rtol=2e-2), max_err

    print("KERNEL_OK")
</pallas_src>

<mosaic_0001>
module attributes {stable_mosaic.version = 11 : i64} {
  func.func @_copy(%arg0: i32, %arg1: memref<8x128xf32, #tpu.memory_space<vmem>>, %arg2: memref<8x128xf32, #tpu.memory_space<vmem>>) attributes {dimension_semantics = [#tpu.dimension_semantics<arbitrary>], iteration_bounds = array<i64: 1>, scalar_prefetch = 0 : i64, scratch_operands = 0 : i64, tpu.core_type = #tpu.core_type<tc>, window_params = [{pipeline_mode = #tpu.pipeline_mode<synchronous>, transform_indices = @transform_0, window_bounds = array<i64: 8, 128>}, {pipeline_mode = #tpu.pipeline_mode<synchronous>, transform_indices = @transform_1, window_bounds = array<i64: 8, 128>}]} {
    %c0 = arith.constant 0 : index
    %c0_0 = arith.constant 0 : index
    %0 = vector.load %arg1[%c0, %c0_0] : memref<8x128xf32, #tpu.memory_space<vmem>>, vector<8x128xf32>
    %c0_1 = arith.constant 0 : index
    %c0_2 = arith.constant 0 : index
    %1 = vector.load %arg2[%c0_1, %c0_2] : memref<8x128xf32, #tpu.memory_space<vmem>>, vector<8x128xf32>
    tpu.vector_store %arg2[%c0_1, %c0_2], %0 {strides = array<i32>} : memref<8x128xf32, #tpu.memory_space<vmem>>, vector<8x128xf32>,
    return
  }
  func.func @transform_0(%arg0: i32) -> (i32, i32) {
    %c0_i32 = arith.constant 0 : i32
    %c0_i32_0 = arith.constant 0 : i32
    %c0_i32_1 = arith.constant 0 : i32
    return %c0_i32, %c0_i32_0 : i32, i32
  }
  func.func @transform_1(%arg0: i32) -> (i32, i32) {
    %c0_i32 = arith.constant 0 : i32
    %c0_i32_0 = arith.constant 0 : i32
    %c0_i32_1 = arith.constant 0 : i32
    return %c0_i32, %c0_i32_0 : i32, i32
  }
}

module attributes {stable_mosaic.version = 11 : i64} {
  func.func @encoder_layer_kernel(%arg0: i32, %arg1: memref<1x8x32xf32, #tpu.memory_space<vmem>>, %arg2: memref<32x96xbf16, #tpu.memory_space<vmem>>, %arg3: memref<32x32xbf16, #tpu.memory_space<vmem>>, %arg4: memref<1x32xf32, #tpu.memory_space<vmem>>, %arg5: memref<1x32xf32, #tpu.memory_space<vmem>>, %arg6: memref<32x64xbf16, #tpu.memory_space<vmem>>, %arg7: memref<1x64xf32, #tpu.memory_space<vmem>>, %arg8: memref<64x32xbf16, #tpu.memory_space<vmem>>, %arg9: memref<1x32xf32, #tpu.memory_space<vmem>>, %arg10: memref<1x32xf32, #tpu.memory_space<vmem>>, %arg11: memref<1x32xf32, #tpu.memory_space<vmem>>, %arg12: memref<1x8x32xf32, #tpu.memory_space<vmem>>) attributes {dimension_semantics = [#tpu.dimension_semantics<parallel>], iteration_bounds = array<i64: 2>, scalar_prefetch = 0 : i64, scratch_operands = 0 : i64, tpu.core_type = #tpu.core_type<tc>, window_params = [{transform_indices = @transform_0, window_bounds = array<i64: 1, 8, 32>}, {pipeline_mode = #tpu.pipeline_mode<synchronous>, transform_indices = @transform_1, window_bounds = array<i64: 32, 96>}, {pipeline_mode = #tpu.pipeline_mode<synchronous>, transform_indices = @transform_2, window_bounds = array<i64: 32, 32>}, {pipeline_mode = #tpu.pipeline_mode<synchronous>, transform_indices = @transform_3, window_bounds = array<i64: 1, 32>}, {pipeline_mode = #tpu.pipeline_mode<synchronous>, transform_indices = @transform_4, window_bounds = array<i64: 1, 32>}, {pipeline_mode = #tpu.pipeline_mode<synchronous>, transform_indices = @transform_5, window_bounds = array<i64: 32, 64>}, {pipeline_mode = #tpu.pipeline_mode<synchronous>, transform_indices = @transform_6, window_bounds = array<i64: 1, 64>}, {pipeline_mode = #tpu.pipeline_mode<synchronous>, transform_indices = @transform_7, window_bounds = array<i64: 64, 32>}, {pipeline_mode = #tpu.pipeline_mode<synchronous>, transform_indices = @transform_8, window_bounds = array<i64: 1, 32>}, {pipeline_mode = #tpu.pipeline_mode<synchronous>, transform_indices = @transform_9, window_bounds = array<i64: 1, 32>}, {pipeline_mode = #tpu.pipeline_mode<synchronous>, transform_indices = @transform_10, window_bounds = array<i64: 1, 32>}, {transform_indices = @transform_11, window_bounds = array<i64: 1, 8, 32>}]} {
    %c0 = arith.constant 0 : index
    %c0_0 = arith.constant 0 : index
    %c0_1 = arith.constant 0 : index
    %0 = vector.load %arg1[%c0, %c0_0, %c0_1] : memref<1x8x32xf32, #tpu.memory_space<vmem>>, vector<1x8x32xf32>
    %1 = vector.shape_cast %0 : vector<1x8x32xf32> to vector<8x32xf32>
    %2 = arith.truncf %1 : vector<8x32xf32> to vector<8x32xbf16>
    %c0_2 = arith.constant 0 : index
    %c0_3 = arith.constant 0 : index
    %3 = vector.load %arg2[%c0_2, %c0_3] : memref<32x96xbf16, #tpu.memory_space<vmem>>, vector<32x96xbf16>
    %cst = arith.constant dense<0.000000e+00> : vector<8x96xf32>
    %4 = tpu.matmul %2, %3, %cst {dimension_numbers = #tpu.dot_dimension_numbers<[1], [0], [0], [1], [0, 0, 1, 1], [], []>} : vector<8x32xbf16>, vector<32x96xbf16>, vector<8x96xf32> -> vector<8x96xf32>
    %5 = vector.extract_strided_slice %4 {offsets = [0, 0], sizes = [8, 8], strides = [1, 1]} : vector<8x96xf32> to vector<8x8xf32>
    %6 = vector.extract_strided_slice %4 {offsets = [0, 8], sizes = [8, 8], strides = [1, 1]} : vector<8x96xf32> to vector<8x8xf32>
    %7 = vector.extract_strided_slice %4 {offsets = [0, 16], sizes = [8, 8], strides = [1, 1]} : vector<8x96xf32> to vector<8x8xf32>
    %8 = vector.extract_strided_slice %4 {offsets = [0, 24], sizes = [8, 8], strides = [1, 1]} : vector<8x96xf32> to vector<8x8xf32>
    %9 = vector.shape_cast %5 : vector<8x8xf32> to vector<1x8x8xf32>
    %10 = vector.shape_cast %6 : vector<8x8xf32> to vector<1x8x8xf32>
    %11 = vector.shape_cast %7 : vector<8x8xf32> to vector<1x8x8xf32>
    %12 = vector.shape_cast %8 : vector<8x8xf32> to vector<1x8x8xf32>
    %13 = tpu.concatenate %9, %10, %11, %12 in 0 : vector<1x8x8xf32>, vector<1x8x8xf32>, vector<1x8x8xf32>, vector<1x8x8xf32> -> vector<4x8x8xf32>
    %14 = arith.truncf %13 : vector<4x8x8xf32> to vector<4x8x8xbf16>
    %15 = vector.extract_strided_slice %4 {offsets = [0, 32], sizes = [8, 8], strides = [1, 1]} : vector<8x96xf32> to vector<8x8xf32>
    %16 = vector.extract_strided_slice %4 {offsets = [0, 40], sizes = [8, 8], strides = [1, 1]} : vector<8x96xf32> to vector<8x8xf32>
    %17 = vector.extract_strided_slice %4 {offsets = [0, 48], sizes = [8, 8], strides = [1, 1]} : vector<8x96xf32> to vector<8x8xf32>
    %18 = vector.extract_strided_slice %4 {offsets = [0, 56], sizes = [8, 8], strides = [1, 1]} : vector<8x96xf32> to vector<8x8xf32>
    %19 = vector.shape_cast %15 : vector<8x8xf32> to vector<1x8x8xf32>
    %20 = vector.shape_cast %16 : vector<8x8xf32> to vector<1x8x8xf32>
    %21 = vector.shape_cast %17 : vector<8x8xf32> to vector<1x8x8xf32>
    %22 = vector.shape_cast %18 : vector<8x8xf32> to vector<1x8x8xf32>
    %23 = tpu.concatenate %19, %20, %21, %22 in 0 : vector<1x8x8xf32>, vector<1x8x8xf32>, vector<1x8x8xf32>, vector<1x8x8xf32> -> vector<4x8x8xf32>
    %24 = arith.truncf %23 : vector<4x8x8xf32> to vector<4x8x8xbf16>
    %25 = vector.extract_strided_slice %4 {offsets = [0, 64], sizes = [8, 8], strides = [1, 1]} : vector<8x96xf32> to vector<8x8xf32>
    %26 = vector.extract_strided_slice %4 {offsets = [0, 72], sizes = [8, 8], strides = [1, 1]} : vector<8x96xf32> to vector<8x8xf32>
    %27 = vector.extract_strided_slice %4 {offsets = [0, 80], sizes = [8, 8], strides = [1, 1]} : vector<8x96xf32> to vector<8x8xf32>
    %28 = vector.extract_strided_slice %4 {offsets = [0, 88], sizes = [8, 8], strides = [1, 1]} : vector<8x96xf32> to vector<8x8xf32>
    %29 = vector.shape_cast %25 : vector<8x8xf32> to vector<1x8x8xf32>
    %30 = vector.shape_cast %26 : vector<8x8xf32> to vector<1x8x8xf32>
    %31 = vector.shape_cast %27 : vector<8x8xf32> to vector<1x8x8xf32>
    %32 = vector.shape_cast %28 : vector<8x8xf32> to vector<1x8x8xf32>
    %33 = tpu.concatenate %29, %30, %31, %32 in 0 : vector<1x8x8xf32>, vector<1x8x8xf32>, vector<1x8x8xf32>, vector<1x8x8xf32> -> vector<4x8x8xf32>
    %34 = arith.truncf %33 : vector<4x8x8xf32> to vector<4x8x8xbf16>
    "tpu.trace_start"() <{level = 10 : i32, message = "bqd,bkd->bqk"}> : () -> ()
    %cst_4 = arith.constant dense<0.000000e+00> : vector<4x8x8xf32>
    %35 = tpu.matmul %14, %24, %cst_4 {dimension_numbers = #tpu.dot_dimension_numbers<[2], [2], [1], [1], [0, 0, 0, 1, 1, 1], [0], [0]>} : vector<4x8x8xbf16>, vector<4x8x8xbf16>, vector<4x8x8xf32> -> vector<4x8x8xf32>
    "tpu.trace_stop"() : () -> ()
    %cst_5 = arith.constant dense<0xFF800000> : vector<4x8xf32>
    %36 = vector.multi_reduction <maximumf>, %35, %cst_5 [2] : vector<4x8x8xf32> to vector<4x8xf32>
    %37 = vector.shape_cast %36 : vector<4x8xf32> to vector<4x8x1xf32>
    %38 = vector.broadcast %37 : vector<4x8x1xf32> to vector<4x8x8xf32>
    %39 = arith.subf %35, %38 : vector<4x8x8xf32>
    %40 = math.exp %39 : vector<4x8x8xf32>
    %cst_6 = arith.constant dense<0.000000e+00> : vector<4x8xf32>
    %41 = vector.multi_reduction <add>, %40, %cst_6 [2] : vector<4x8x8xf32> to vector<4x8xf32>
    %42 = vector.shape_cast %41 : vector<4x8xf32> to vector<4x8x1xf32>
    %43 = tpu.reciprocal %42 {approx = true} : vector<4x8x1xf32> -> vector<4x8x1xf32>
    %44 = vector.broadcast %43 : vector<4x8x1xf32> to vector<4x8x8xf32>
    %45 = arith.mulf %40, %44 : vector<4x8x8xf32>
    %46 = arith.truncf %45 : vector<4x8x8xf32> to vector<4x8x8xbf16>
    "tpu.trace_start"() <{level = 10 : i32, message = "bqk,bkd->bqd"}> : () -> ()
    %cst_7 = arith.constant dense<0.000000e+00> : vector<4x8x8xf32>
    %47 = tpu.matmul %46, %34, %cst_7 {dimension_numbers = #tpu.dot_dimension_numbers<[2], [1], [1], [2], [0, 0, 0, 1, 1, 2], [0], [0]>} : vector<4x8x8xbf16>, vector<4x8x8xbf16>, vector<4x8x8xf32> -> vector<4x8x8xf32>
    "tpu.trace_stop"() : () -> ()
    %48 = vector.extract_strided_slice %47 {offsets = [0, 0, 0], sizes = [1, 8, 8], strides = [1, 1, 1]} : vector<4x8x8xf32> to vector<1x8x8xf32>
    %49 = vector.shape_cast %48 : vector<1x8x8xf32> to vector<8x8xf32>
    %50 = vector.extract_strided_slice %47 {offsets = [1, 0, 0], sizes = [1, 8, 8], strides = [1, 1, 1]} : vector<4x8x8xf32> to vector<1x8x8xf32>
    %51 = vector.shape_cast %50 : vector<1x8x8xf32> to vector<8x8xf32>
    %52 = vector.extract_strided_slice %47 {offsets = [2, 0, 0], sizes = [1, 8, 8], strides = [1, 1, 1]} : vector<4x8x8xf32> to vector<1x8x8xf32>
    %53 = vector.shape_cast %52 : vector<1x8x8xf32> to vector<8x8xf32>
    %54 = vector.extract_strided_slice %47 {offsets = [3, 0, 0], sizes = [1, 8, 8], strides = [1, 1, 1]} : vector<4x8x8xf32> to vector<1x8x8xf32>
    %55 = vector.shape_cast %54 : vector<1x8x8xf32> to vector<8x8xf32>
    %56 = tpu.concatenate %49, %51, %53, %55 in 1 : vector<8x8xf32>, vector<8x8xf32>, vector<8x8xf32>, vector<8x8xf32> -> vector<8x32xf32>
    %57 = arith.truncf %56 : vector<8x32xf32> to vector<8x32xbf16>
    %c0_8 = arith.constant 0 : index
    %c0_9 = arith.constant 0 : index
    %58 = vector.load %arg3[%c0_8, %c0_9] : memref<32x32xbf16, #tpu.memory_space<vmem>>, vector<32x32xbf16>
    %cst_10 = arith.constant dense<0.000000e+00> : vector<8x32xf32>
    %59 = tpu.matmul %57, %58, %cst_10 {dimension_numbers = #tpu.dot_dimension_numbers<[1], [0], [0], [1], [0, 0, 1, 1], [], []>} : vector<8x32xbf16>, vector<32x32xbf16>, vector<8x32xf32> -> vector<8x32xf32>
    %60 = arith.addf %1, %59 : vector<8x32xf32>
    %cst_11 = arith.constant dense<0.000000e+00> : vector<8xf32>
    %61 = vector.multi_reduction <add>, %60, %cst_11 [1] : vector<8x32xf32> to vector<8xf32>
    %62 = vector.shape_cast %61 : vector<8xf32> to vector<8x1xf32>
    %cst_12 = arith.constant 3.200000e+01 : f32
    %63 = vector.broadcast %cst_12 : f32 to vector<8x1xf32>
    %64 = arith.divf %62, %63 : vector<8x1xf32>
    %65 = vector.broadcast %64 : vector<8x1xf32> to vector<8x32xf32>
    %66 = arith.subf %60, %65 : vector<8x32xf32>
    %67 = arith.mulf %66, %66 : vector<8x32xf32>
    %cst_13 = arith.constant dense<0.000000e+00> : vector<8xf32>
    %68 = vector.multi_reduction <add>, %67, %cst_13 [1] : vector<8x32xf32> to vector<8xf32>
    %69 = vector.shape_cast %68 : vector<8xf32> to vector<8x1xf32>
    %cst_14 = arith.constant 3.200000e+01 : f32
    %70 = vector.broadcast %cst_14 : f32 to vector<8x1xf32>
    %71 = arith.divf %69, %70 : vector<8x1xf32>
    %72 = vector.broadcast %64 : vector<8x1xf32> to vector<8x32xf32>
    %73 = arith.subf %60, %72 : vector<8x32xf32>
    %cst_15 = arith.constant 9.99999974E-6 : f32
    %74 = vector.broadcast %cst_15 : f32 to vector<8x1xf32>
    %75 = arith.addf %71, %74 : vector<8x1xf32>
    %76 = math.rsqrt %75 : vector<8x1xf32>
    %77 = vector.broadcast %76 : vector<8x1xf32> to vector<8x32xf32>
    %78 = arith.mulf %73, %77 : vector<8x32xf32>
    %c0_16 = arith.constant 0 : index
    %c0_17 = arith.constant 0 : index
    %79 = vector.load %arg4[%c0_16, %c0_17] : memref<1x32xf32, #tpu.memory_space<vmem>>, vector<1x32xf32>
    %80 = vector.broadcast %79 : vector<1x32xf32> to vector<8x32xf32>
    %81 = arith.mulf %78, %80 : vector<8x32xf32>
    %c0_18 = arith.constant 0 : index
    %c0_19 = arith.constant 0 : index
    %82 = vector.load %arg5[%c0_18, %c0_19] : memref<1x32xf32, #tpu.memory_space<vmem>>, vector<1x32xf32>
    %83 = vector.broadcast %82 : vector<1x32xf32> to vector<8x32xf32>
    %84 = arith.addf %81, %83 : vector<8x32xf32>
    %85 = arith.truncf %84 : vector<8x32xf32> to vector<8x32xbf16>
    %c0_20 = arith.constant 0 : index
    %c0_21 = arith.constant 0 : index
    %86 = vector.load %arg6[%c0_20, %c0_21] : memref<32x64xbf16, #tpu.memory_space<vmem>>, vector<32x64xbf16>
    %cst_22 = arith.constant dense<0.000000e+00> : vector<8x64xf32>
    %87 = tpu.matmul %85, %86, %cst_22 {dimension_numbers = #tpu.dot_dimension_numbers<[1], [0], [0], [1], [0, 0, 1, 1], [], []>} : vector<8x32xbf16>, vector<32x64xbf16>, vector<8x64xf32> -> vector<8x64xf32>
    %c0_23 = arith.constant 0 : index
    %c0_24 = arith.constant 0 : index
    %88 = vector.load %arg7[%c0_23, %c0_24] : memref<1x64xf32, #tpu.memory_space<vmem>>, vector<1x64xf32>
    %89 = vector.broadcast %88 : vector<1x64xf32> to vector<8x64xf32>
    %90 = arith.addf %87, %89 : vector<8x64xf32>
    %cst_25 = arith.constant 0.000000e+00 : f32
    %91 = vector.broadcast %cst_25 : f32 to vector<8x64xf32>
    %92 = arith.maximumf %90, %91 : vector<8x64xf32>
    %93 = arith.truncf %92 : vector<8x64xf32> to vector<8x64xbf16>
    %c0_26 = arith.constant 0 : index
    %c0_27 = arith.constant 0 : index
    %94 = vector.load %arg8[%c0_26, %c0_27] : memref<64x32xbf16, #tpu.memory_space<vmem>>, vector<64x32xbf16>
    %cst_28 = arith.constant dense<0.000000e+00> : vector<8x32xf32>
    %95 = tpu.matmul %93, %94, %cst_28 {dimension_numbers = #tpu.dot_dimension_numbers<[1], [0], [0], [1], [0, 0, 1, 1], [], []>} : vector<8x64xbf16>, vector<64x32xbf16>, vector<8x32xf32> -> vector<8x32xf32>
    %c0_29 = arith.constant 0 : index
    %c0_30 = arith.constant 0 : index
    %96 = vector.load %arg9[%c0_29, %c0_30] : memref<1x32xf32, #tpu.memory_space<vmem>>, vector<1x32xf32>
    %97 = vector.broadcast %96 : vector<1x32xf32> to vector<8x32xf32>
    %98 = arith.addf %95, %97 : vector<8x32xf32>
    %99 = arith.addf %84, %98 : vector<8x32xf32>
    %cst_31 = arith.constant dense<0.000000e+00> : vector<8xf32>
    %100 = vector.multi_reduction <add>, %99, %cst_31 [1] : vector<8x32xf32> to vector<8xf32>
    %101 = vector.shape_cast %100 : vector<8xf32> to vector<8x1xf32>
    %cst_32 = arith.constant 3.200000e+01 : f32
    %102 = vector.broadcast %cst_32 : f32 to vector<8x1xf32>
    %103 = arith.divf %101, %102 : vector<8x1xf32>
    %104 = vector.broadcast %103 : vector<8x1xf32> to vector<8x32xf32>
    %105 = arith.subf %99, %104 : vector<8x32xf32>
    %106 = arith.mulf %105, %105 : vector<8x32xf32>
    %cst_33 = arith.constant dense<0.000000e+00> : vector<8xf32>
    %107 = vector.multi_reduction <add>, %106, %cst_33 [1] : vector<8x32xf32> to vector<8xf32>
    %108 = vector.shape_cast %107 : vector<8xf32> to vector<8x1xf32>
    %cst_34 = arith.constant 3.200000e+01 : f32
    %109 = vector.broadcast %cst_34 : f32 to vector<8x1xf32>
    %110 = arith.divf %108, %109 : vector<8x1xf32>
    %111 = vector.broadcast %103 : vector<8x1xf32> to vector<8x32xf32>
    %112 = arith.subf %99, %111 : vector<8x32xf32>
    %cst_35 = arith.constant 9.99999974E-6 : f32
    %113 = vector.broadcast %cst_35 : f32 to vector<8x1xf32>
    %114 = arith.addf %110, %113 : vector<8x1xf32>
    %115 = math.rsqrt %114 : vector<8x1xf32>
    %116 = vector.broadcast %115 : vector<8x1xf32> to vector<8x32xf32>
    %117 = arith.mulf %112, %116 : vector<8x32xf32>
    %c0_36 = arith.constant 0 : index
    %c0_37 = arith.constant 0 : index
    %118 = vector.load %arg10[%c0_36, %c0_37] : memref<1x32xf32, #tpu.memory_space<vmem>>, vector<1x32xf32>
    %119 = vector.broadcast %118 : vector<1x32xf32> to vector<8x32xf32>
    %120 = arith.mulf %117, %119 : vector<8x32xf32>
    %c0_38 = arith.constant 0 : index
    %c0_39 = arith.constant 0 : index
    %121 = vector.load %arg11[%c0_38, %c0_39] : memref<1x32xf32, #tpu.memory_space<vmem>>, vector<1x32xf32>
    %122 = vector.broadcast %121 : vector<1x32xf32> to vector<8x32xf32>
    %123 = arith.addf %120, %122 : vector<8x32xf32>
    %124 = vector.shape_cast %123 : vector<8x32xf32> to vector<1x8x32xf32>
    %c0_40 = arith.constant 0 : index
    %c0_41 = arith.constant 0 : index
    %c0_42 = arith.constant 0 : index
    %125 = vector.load %arg12[%c0_40, %c0_41, %c0_42] : memref<1x8x32xf32, #tpu.memory_space<vmem>>, vector<1x8x32xf32>
    tpu.vector_store %arg12[%c0_40, %c0_41, %c0_42], %124 {strides = array<i32>} : memref<1x8x32xf32, #tpu.memory_space<vmem>>, vector<1x8x32xf32>,
    return
  }
  func.func @transform_0(%arg0: i32) -> (i32, i32, i32) {
    %c0_i32 = arith.constant 0 : i32
    %c0_i32_0 = arith.constant 0 : i32
    %c0_i32_1 = arith.constant 0 : i32
    return %arg0, %c0_i32, %c0_i32_0 : i32, i32, i32
  }
  func.func @transform_1(%arg0: i32) -> (i32, i32) {
    %c0_i32 = arith.constant 0 : i32
    %c0_i32_0 = arith.constant 0 : i32
    %c0_i32_1 = arith.constant 0 : i32
    return %c0_i32, %c0_i32_0 : i32, i32
  }
  func.func @transform_2(%arg0: i32) -> (i32, i32) {
    %c0_i32 = arith.constant 0 : i32
    %c0_i32_0 = arith.constant 0 : i32
    %c0_i32_1 = arith.constant 0 : i32
    return %c0_i32, %c0_i32_0 : i32, i32
  }
  func.func @transform_3(%arg0: i32) -> (i32, i32) {
    %c0_i32 = arith.constant 0 : i32
    %c0_i32_0 = arith.constant 0 : i32
    %c0_i32_1 = arith.constant 0 : i32
    return %c0_i32, %c0_i32_0 : i32, i32
  }
  func.func @transform_4(%arg0: i32) -> (i32, i32) {
    %c0_i32 = arith.constant 0 : i32
    %c0_i32_0 = arith.constant 0 : i32
    %c0_i32_1 = arith.constant 0 : i32
    return %c0_i32, %c0_i32_0 : i32, i32
  }
  func.func @transform_5(%arg0: i32) -> (i32, i32) {
    %c0_i32 = arith.constant 0 : i32
    %c0_i32_0 = arith.constant 0 : i32
    %c0_i32_1 = arith.constant 0 : i32
    return %c0_i32, %c0_i32_0 : i32, i32
  }
  func.func @transform_6(%arg0: i32) -> (i32, i32) {
    %c0_i32 = arith.constant 0 : i32
    %c0_i32_0 = arith.constant 0 : i32
    %c0_i32_1 = arith.constant 0 : i32
    return %c0_i32, %c0_i32_0 : i32, i32
  }
  func.func @transform_7(%arg0: i32) -> (i32, i32) {
    %c0_i32 = arith.constant 0 : i32
    %c0_i32_0 = arith.constant 0 : i32
    %c0_i32_1 = arith.constant 0 : i32
    return %c0_i32, %c0_i32_0 : i32, i32
  }
  func.func @transform_8(%arg0: i32) -> (i32, i32) {
    %c0_i32 = arith.constant 0 : i32
    %c0_i32_0 = arith.constant 0 : i32
    %c0_i32_1 = arith.constant 0 : i32
    return %c0_i32, %c0_i32_0 : i32, i32
  }
  func.func @transform_9(%arg0: i32) -> (i32, i32) {
    %c0_i32 = arith.constant 0 : i32
    %c0_i32_0 = arith.constant 0 : i32
    %c0_i32_1 = arith.constant 0 : i32
    return %c0_i32, %c0_i32_0 : i32, i32
  }
  func.func @transform_10(%arg0: i32) -> (i32, i32) {
    %c0_i32 = arith.constant 0 : i32
    %c0_i32_0 = arith.constant 0 : i32
    %c0_i32_1 = arith.constant 0 : i32
    return %c0_i32, %c0_i32_0 : i32, i32
  }
  func.func @transform_11(%arg0: i32) -> (i32, i32, i32) {
    %c0_i32 = arith.constant 0 : i32
    %c0_i32_0 = arith.constant 0 : i32
    %c0_i32_1 = arith.constant 0 : i32
    return %arg0, %c0_i32, %c0_i32_0 : i32, i32, i32
  }
}

</mosaic_0001>

<bundles_post_ra>
// kernel: tpu_custom_call.1
= control target key start
LH: loop header
LB: loop body
LE: loop exit
PB: predicated region body
PF: predicated region fallthrough
CT: control target
= control target key end

     0   :  { %6 = vsyncpa [#allocation3], 0  ;;  %s114_s0 = inlined_call_operand.hbm [shape: f32[8,128], index: 0, kind: input, shape index: {}]   ;;  %s115_s1 = inlined_call_operand.hbm [shape: f32[8,128], index: 1, kind: output, shape index: {}]  }
   0x1   :  { %7 = vsyncpa [#allocation4], 0  ;;  %s13_s8 = sshll.u32 %s114_s0, 4  ;;  %s96_s9 = smov [#allocation2]   ;;  %s14_s8 = int_to_ptr.hbm [resolvable:$true] %s13_s8 }
   0x2   :  { %s15_s10 = sshll.u32 %s96_s9, 4  ;;  %s16_s10 = int_to_ptr.vmem [resolvable:$true] %s15_s10 }
   0x3   :  { %18 = dma.hbm_to_vmem [thread:$0]  %s14_s8, 128, %s16_s10, [#allocation3]  }
   0x4   :  { %92 = dma.done.wait [#allocation3], 128  }
   0x5   :  { %93 = vsyncadd [#allocation3], 4294967168  ;;  %s97_s11 = smov [#allocation5]   ;;  %s32_s15 = sshll.u32 %s115_s1, 4  ;;  %v23_v0 = vld [vmem:[#allocation2] sm:$0xff]  ;;  %s33_s15 = int_to_ptr.hbm [resolvable:$true] %s32_s15 }
   0x6   :  { %s30_s12 = sshll.u32 %s97_s11, 4  ;;  %24 = vst [vmem:[#allocation5] sm:$0xff] %v23_v0  ;;  %s31_s12 = int_to_ptr.vmem [resolvable:$true] %s30_s12 }
   0x7   :  { %35 = dma.vmem_to_hbm [thread:$0]  %s31_s12, 128, %s33_s15, [#allocation4]  }
   0x8   :  { %94 = dma.done.wait [#allocation4], 128  }
   0x9   :  { %95 = vsyncadd [#allocation4], 4294967168 }
   0xa   :  { %40 = vsyncpa [#allocation3], 1 }
   0xb   :  { %41 = vsyncpa [#allocation4], 1 }

// kernel: _encoder_layer_fwd.1
= control target key start
LH: loop header
LB: loop body
LE: loop exit
PB: predicated region body
PF: predicated region fallthrough
CT: control target
= control target key end

     0   :  { %s1124_s17 = smov 0   ;;  %s1242_s0 = inlined_call_operand.vmem [shape: f32[2,8,32], index: 0, kind: input, shape index: {}]   ;;  %s1243_s1 = inlined_call_operand.vmem [shape: bf16[32,96], index: 1, kind: input, shape index: {}]   ;;  %s1244_s2 = inlined_call_operand.vmem [shape: bf16[32,32], index: 2, kind: input, shape index: {}]   ;;  %s1245_s3 = inlined_call_operand.vmem [shape: f32[1,32], index: 3, kind: input, shape index: {}]   ;;  %s1246_s4 = inlined_call_operand.vmem [shape: f32[1,32], index: 4, kind: input, shape index: {}]   ;;  %s1247_s5 = inlined_call_operand.vmem [shape: bf16[32,64], index: 5, kind: input, shape index: {}]   ;;  %s1248_s6 = inlined_call_operand.vmem [shape: f32[1,64], index: 6, kind: input, shape index: {}]   ;;  %s1249_s7 = inlined_call_operand.vmem [shape: bf16[64,32], index: 7, kind: input, shape index: {}]   ;;  %s1250_s8 = inlined_call_operand.vmem [shape: f32[1,32], index: 8, kind: input, shape index: {}]   ;;  %s1251_s9 = inlined_call_operand.vmem [shape: f32[1,32], index: 9, kind: input, shape index: {}]   ;;  %s1252_s10 = inlined_call_operand.vmem [shape: f32[1,32], index: 10, kind: input, shape index: {}]   ;;  %s1253_s11 = inlined_call_operand.vmem [shape: f32[2,8,32], index: 11, kind: output, shape index: {}]  }
   0x1 LB: > { %s931_s18 = sadd.s32 4294967295, %s1053_s17   ;;  %p935_p0 = scmp.ge.s32.totalorder %s1053_s17, 1  ;;  %s1053_s17 = sphi %s1124_s17, %s21_s17  }
   0x2   : > { %p336_p1 = scmp.lt.s32.totalorder %s1053_s17, 3 }
   0x4   : > { %p337_p2 = pnand %p935_p0, %p336_p1 }
   0x5   : > { %p374_p3 = scmp.lt.s32.totalorder (!%p337_p2), %s931_s18, 1  ;;  %s1055_s27 = smov (!%p337_p2), 104  }
   0x6   : > { %340 = sbr.rel (%p337_p2) target bundleno = 1969 (0x7b1), region = 64  ;;  %s1056_s28 = smov (!%p337_p2), 120  }
   0x7   : > { %s1057_s29 = smov (!%p337_p2), 112   ;;  %s1058_s30 = smov (!%p337_p2), 96  }
   0x8   : > { %s1059_s12 = smov (!%p337_p2), 64   ;;  %s1060_s13 = smov (!%p337_p2), 16  }
   0x9   : > { %s1061_s14 = smov (!%p337_p2), 8   ;;  %s1062_s15 = smov (!%p337_p2), 24  }
   0xb   : > { %v993_v0 = vld [vmem:[%s1243_s1 + $0x8] sm:$0xff]  ;;  %v992_v1 = vld [vmem:[%s1243_s1] sm:$0xff]  ;;  %s1255_s18 = smov (!%p374_p3, %s931_s18), 1  ;;  %vm401_vm0 = vcmask 261120   ;;  %vm437_vm1 = vcmask 64512   ;;  %vm582_vm2 = vcmask 1043456  }
   0xc   : > { %411 = vmatpush.bf16.msra.mxu0 %v993_v0  ;;  %s936_s23 = sshll.u32 %s1255_s18, 3  ;;  %vm675_vm3 = vcmask 130048   ;;  %vm677_vm4 = vcmask 195584   ;;  %vm827_vm9 = vcmask 523264  }
   0xd   : > { %s377_s26 = scalar_lea.vmem %s1242_s0, %s936_s23 }
   0xe   : > { %v1146_v2 = vld [vmem:[%s377_s26] sm:$0xff] }
   0xf   : > { %v384_v3 = vpack.c.bf16 %v1146_v2, %v1146_v2 }
  0x10   : > { %412 = vmatpush.bf16.msra.mxu0 %v992_v1 }
  0x13   : > { %946 = vmatmul.msk.bf16.vlgmr.msra.gmra.mxu0 %vm401_vm0, %v384_v3 }
  0x90   : > { %v414_v4 = vpop.f32.mrf.mxu0 }
  0x91   : > { %425 = vrot.lane.b32.xlu1 %v414_v4, %s1055_s27  ;;  %419 = vrot.lane.b32.xlu0 %v414_v4, %s1056_s28  ;;  %v428_v5 = vpack.c.bf16 %v414_v4, %v414_v4 }
  0x93   : > { %v433_v7 = vunpack.c.l.b16 %v428_v5 }
  0x95   : > { %v1151_v8 = vpack.c.b16 %v433_v7, %v433_v7 }
  0x98   : > { %v416_v6 = vpop.f32.mrf.mxu0 }
  0x99   : > { %422 = vrot.lane.b32.xlu0 %v414_v4, %s1057_s29 }
  0xa1   : > { %435 = vrot.lane.b32.xlu0 %v1151_v8, %s1058_s30 }
 0x103   : > { %v420_v9 = vpop.permute.xlu0 %419  ;;  %v426_v15 = vpop.permute.xlu1 %425 }
 0x104   : > { %v429_v10 = vpack.c.bf16 %v420_v9, %v420_v9  ;;  %v431_v17 = vpack.c.bf16 %v426_v15, %v426_v15 }
 0x106   : > { %v458_v11 = vunpack.c.l.b16 %v429_v10  ;;  %v506_v20 = vunpack.c.l.b16 %v431_v17 }
 0x108   : > { %v1154_v12 = vpack.c.b16 %v458_v11, %v458_v11  ;;  %v507_v22 = vpack.c.b16 %v506_v20, %v506_v20 }
 0x10a   : > { %460 = vrot.lane.b32.xlu1 %v1154_v12, %s1058_s30 }
 0x10b   : > { %v423_v13 = vpop.permute.xlu0 %422 }
 0x10c   : > { %v430_v14 = vpack.c.bf16 %v423_v13, %v423_v13 }
 0x10e   : > { %v482_v16 = vunpack.c.l.b16 %v430_v14 }
 0x110   : > { %v483_v18 = vpack.c.b16 %v482_v16, %v482_v16 }
 0x112   : > { %484 = vrot.lane.b32.xlu2 %v483_v18, %s1058_s30 }
 0x113   : > { %v436_v19 = vpop.permute.xlu0 %435 }
 0x114   : > { %v442_v21 = vsel %vm437_vm1, %v436_v19, 0 }
 0x115   : > { %451 = vmatpush.bf16.xpose.msra.mxu1 %v442_v21 }
 0x11a   : > { %508 = vrot.lane.b32.xlu2 %v507_v22, %s1058_s30 }
 0x11c   : > { %947 = vmatmul.msk.bf16.vlgmr.msra.gmra.mxu1 %vm437_vm1, %v428_v5 }
 0x16c   : > { %v485_v23 = vpop.permute.xlu2 %484 }
 0x16d   : > { %v490_v24 = vsel %vm437_vm1, %v485_v23, 0 }
 0x16e   : > { %499 = vmatpush.bf16.xpose.msra.mxu3 %v490_v24 }
 0x174   : > { %v509_v25 = vpop.permute.xlu2 %508 }
 0x175   : > { %949 = vmatmul.msk.bf16.vlgmr.msra.gmra.mxu3 %vm437_vm1, %v430_v14  ;;  %v514_v26 = vsel %vm437_vm1, %v509_v25, 0 }
 0x176   : > { %523 = vmatpush.bf16.xpose.msrb.mxu0 %v514_v26 }
 0x17c   : > { %v461_v27 = vpop.permute.xlu1 %460 }
 0x17d   : > { %950 = vmatmul.msk.bf16.vlgmr.msrb.gmra.mxu0 %vm437_vm1, %v431_v17  ;;  %v466_v28 = vsel %vm437_vm1, %v461_v27, 0 }
 0x17e   : > { %475 = vmatpush.bf16.xpose.msra.mxu2 %v466_v28 }
 0x185   : > { %948 = vmatmul.msk.bf16.vlgmr.msra.gmra.mxu2 %vm437_vm1, %v429_v10 }
 0x199   : > { %v453_v29 = vpop.f32.mrf.mxu1 }
 0x19a   : > { %v529_v36 = vsel %vm437_vm1, %v453_v29, -inf }
 0x1a1   : > { %v455_v30 = vpop.f32.mrf.mxu1 }
 0x1a2   : > { %v995_v30 = vld [vmem:[%s1244_s2 + $0x8] sm:$0xff] }
 0x1f8   : > { %v501_v31 = vpop.f32.mrf.mxu3 }
 0x1f9   : > { %v535_v32 = vsel %vm437_vm1, %v501_v31, -inf }
 0x1fa   : > { %536 = vmax.xlane.f32.xlu2 %v535_v32  ;;  %v525_v33 = vpop.f32.mrf.mxu0 }
 0x1fb   : > { %v538_v34 = vsel %vm437_vm1, %v525_v33, -inf }
 0x1fc   : > { %539 = vmax.xlane.f32.xlu0 %v538_v34 }
 0x200   : > { %v503_v35 = vpop.f32.mrf.mxu3 }
 0x202   : > { %530 = vmax.xlane.f32.xlu2 %v529_v36  ;;  %v527_v37 = vpop.f32.mrf.mxu0 }
 0x208   : > { %v477_v38 = vpop.f32.mrf.mxu2 }
 0x209   : > { %v532_v39 = vsel %vm437_vm1, %v477_v38, -inf }
 0x20a   : > { %533 = vmax.xlane.f32.xlu1 %v532_v39 }
 0x210   : > { %v479_v40 = vpop.f32.mrf.mxu2 }
 0x26d   : > { %v537_v41 = vpop.xlane.xlu2 %536 }
 0x26e   : > { %v543_v42 = vsub.f32 %v501_v31, %v537_v41  ;;  %v994_v31 = vld [vmem:[%s1244_s2] sm:$0xff] }
 0x26f   : > { %v540_v43 = vpop.xlane.xlu0 %539 }
 0x270   : > { %v549_v44 = vmul.f32 1.442695, %v543_v42  ;;  %v544_v45 = vsub.f32 %v525_v33, %v540_v43  ;;  %v1063_v43 = vmov 32.0  }
 0x272   : > { %1025 = vpow2.f32 %v549_v44  ;;  %v551_v46 = vmul.f32 1.442695, %v544_v45 }
 0x274   : > { %1027 = vpow2.f32 %v551_v46 }
 0x275   : > { %v531_v56 = vpop.xlane.xlu2 %530 }
 0x276   : > { %v541_v57 = vsub.f32 %v453_v29, %v531_v56  ;;  %v1001_v56 = vld [vmem:[%s1249_s7 + $0x18] sm:$0xff] }
 0x278   : > { %v1026_v47 = vpop.eup %1025  ;;  %v545_v58 = vmul.f32 1.442695, %v541_v57 }
 0x279   : > { %v559_v48 = vsel %vm437_vm1, %v1026_v47, 0.0 }
 0x27a   : > { %v1028_v49 = vpop.eup %1027  ;;  %560 = vadd.xlane.f32.xlu2 %v559_v48 }
 0x27b   : > { %v562_v50 = vsel %vm437_vm1, %v1028_v49, 0.0 }
 0x27c   : > { %563 = vadd.xlane.f32.xlu0 %v562_v50 }
 0x27d   : > { %v534_v51 = vpop.xlane.xlu1 %533 }
 0x27e   : > { %v542_v52 = vsub.f32 %v477_v38, %v534_v51 }
 0x280   : > { %v547_v53 = vmul.f32 1.442695, %v542_v52 }
 0x282   : > { %1029 = vpow2.f32 %v547_v53 }
 0x283   : > { %1031 = vpow2.f32 %v545_v58 }
 0x288   : > { %v1030_v54 = vpop.eup %1029 }
 0x289   : > { %v556_v55 = vsel %vm437_vm1, %v1030_v54, 0.0  ;;  %v1032_v59 = vpop.eup %1031 }
 0x28a   : > { %557 = vadd.xlane.f32.xlu1 %v556_v55  ;;  %v553_v60 = vsel %vm437_vm1, %v1032_v59, 0.0  ;;  %v996_v55 = vld [vmem:[%s1247_s5] sm:$0xff] }
 0x290   : > { %641 = vrot.lane.b32.xlu0 %v507_v22, %s1059_s12 }
 0x292   : > { %620 = vrot.lane.b32.xlu2 %v483_v18, %s1059_s12 }
 0x298   : > { %577 = vrot.lane.b32.xlu0 %v1151_v8, %s1059_s12 }
 0x2a3   : > { %599 = vrot.lane.b32.xlu1 %v1154_v12, %s1059_s12 }
 0x2cd   : > { %554 = vadd.xlane.f32.xlu1 %v553_v60 }
 0x2ed   : > { %v561_v61 = vpop.xlane.xlu2 %560 }
 0x2ee   : > { %1033 = vrcp.f32 %v561_v61 }
 0x2ef   : > { %v564_v0 = vpop.xlane.xlu0 %563 }
 0x2f0   : > { %1035 = vrcp.f32 %v564_v0 }
 0x2f4   : > { %v1034_v62 = vpop.eup %1033 }
 0x2f5   : > { %v571_v63 = vmul.f32 %v1034_v62, %v1026_v47  ;;  %v621_v1 = vpop.permute.xlu2 %620 }
 0x2f6   : > { %v626_v3 = vsel %vm582_vm2, %v621_v1, 0  ;;  %v1036_v5 = vpop.eup %1035 }
 0x2f7   : > { %635 = vmatpush.bf16.msrb.mxu3 %v626_v3  ;;  %v575_v4 = vpack.c.bf16 %v571_v63, %v571_v63  ;;  %v572_v6 = vmul.f32 %v1036_v5, %v1028_v49 }
 0x2f9   : > { %v576_v9 = vpack.c.bf16 %v572_v6, %v572_v6  ;;  %v1020_v6 = vld [vmem:[%s1246_s4] ss:$0 sm:$0xff] }
 0x2fa   : > { %953 = vmatmul.msk.bf16.vlgmr.msrb.gmra.mxu3 %vm437_vm1, %v575_v4  ;;  %v1019_v4 = vld [vmem:[%s1245_s3] ss:$0 sm:$0xff] }
 0x2fb   : > { %835 = vmatpush.bf16.msra.mxu3 %v1001_v56 }
 0x2fd   : > { %v558_v10 = vpop.xlane.xlu1 %557 }
 0x2fe   : > { %1037 = vrcp.f32 %v558_v10 }
 0x302   : > { %v642_v7 = vpop.permute.xlu0 %641 }
 0x303   : > { %v647_v8 = vsel %vm582_vm2, %v642_v7, 0 }
 0x304   : > { %656 = vmatpush.bf16.msra.mxu0 %v647_v8  ;;  %v1038_v13 = vpop.eup %1037 }
 0x305   : > { %v570_v14 = vmul.f32 %v1038_v13, %v1030_v54  ;;  %v1021_v13 = vld [vmem:[%s1248_s6] ss:$0 sm:$0xff] }
 0x307   : > { %954 = vmatmul.msk.bf16.vlgmr.msra.gmra.mxu0 %vm437_vm1, %v576_v9  ;;  %v574_v17 = vpack.c.bf16 %v570_v14, %v570_v14 }
 0x30a   : > { %v578_v11 = vpop.permute.xlu0 %577 }
 0x30b   : > { %v584_v12 = vsel %vm582_vm2, %v578_v11, 0  ;;  %v999_v11 = vld [vmem:[%s1249_s7 + $0x8] sm:$0xff] }
 0x30c   : > { %593 = vmatpush.bf16.msrb.mxu1 %v584_v12  ;;  %v998_v12 = vld [vmem:[%s1249_s7] sm:$0xff] }
 0x310   : > { %705 = vmatpush.bf16.msra.mxu1 %v995_v30 }
 0x314   : > { %706 = vmatpush.bf16.msra.mxu1 %v994_v31 }
 0x315   : > { %v600_v15 = vpop.permute.xlu1 %599 }
 0x316   : > { %v605_v16 = vsel %vm582_vm2, %v600_v15, 0 }
 0x317   : > { %614 = vmatpush.bf16.msrb.mxu2 %v605_v16 }
 0x31a   : > { %952 = vmatmul.msk.bf16.vlgmr.msrb.gmra.mxu2 %vm437_vm1, %v574_v17 }
 0x340   : > { %v555_v18 = vpop.xlane.xlu1 %554 }
 0x341   : > { %1039 = vrcp.f32 %v555_v18 }
 0x342   : > { %1041 = vrcp.f32 %v1063_v43 }
 0x347   : > { %v1040_v19 = vpop.eup %1039 }
 0x348   : > { %v569_v20 = vmul.f32 %v1040_v19, %v1032_v59  ;;  %v1042_v44 = vpop.eup %1041  ;;  %v1000_v59 = vld [vmem:[%s1249_s7 + $0x10] sm:$0xff]  ;;  %v1022_v19 = vld [vmem:[%s1250_s8] ss:$0 sm:$0xff] }
 0x349   : > { %v717_v45 = vmul.f32 32.0, %v1042_v44  ;;  %vm721_vm5 = vweird.f32 %v1042_v44  ;;  %836 = vmatpush.bf16.msra.mxu3 %v1000_v59 }
 0x34a   : > { %v573_v21 = vpack.c.bf16 %v569_v20, %v569_v20 }
 0x34b   : > { %v718_v46 = vsub.f32 1.0, %v717_v45 }
 0x34c   : > { %951 = vmatmul.msk.bf16.vlgmr.msrb.gmra.mxu1 %vm437_vm1, %v573_v21 }
 0x34d   : > { %v719_v47 = vmul.f32 %v1042_v44, %v718_v46  ;;  %837 = vmatpush.bf16.msra.mxu3 %v999_v11 }
 0x34f   : > { %v720_v48 = vadd.f32 %v1042_v44, %v719_v47 }
 0x351   : > { %v722_v49 = vsel %vm721_vm5, %v1042_v44, %v720_v48  ;;  %838 = vmatpush.bf16.msra.mxu3 %v998_v12 }
 0x37d   : > { %v637_v22 = vpop.f32.mrf.mxu3 }
 0x37e   : > { %667 = vrot.lane.b32.xlu0 %v637_v22, %s1060_s13 }
 0x384   : > { %v658_v23 = vpop.f32.mrf.mxu0 }
 0x385   : > { %v639_v24 = vpop.f32.mrf.mxu3 }
 0x38c   : > { %v660_v25 = vpop.f32.mrf.mxu0 }
 0x39d   : > { %v616_v26 = vpop.f32.mrf.mxu2 }
 0x39e   : > { %663 = vrot.lane.b32.xlu2 %v616_v26, %s1061_s14  ;;  %s381_s14 = scalar_lea.vmem %s1253_s11, %s936_s23 }
 0x3a5   : > { %v618_v27 = vpop.f32.mrf.mxu2 }
 0x3a6   : > { %671 = vrot.lane.b32.xlu2 %v658_v23, %s1062_s15 }
 0x3c9   : > { %v595_v28 = vpop.f32.mrf.mxu1 }
 0x3d1   : > { %v597_v29 = vpop.f32.mrf.mxu1 }
 0x3f0   : > { %v668_v34 = vpop.permute.xlu0 %667 }
 0x3f8   : > { %v664_v32 = vpop.permute.xlu2 %663 }
 0x3f9   : > { %v674_v33 = vsel %vm437_vm1, %v595_v28, %v664_v32 }
 0x3fa   : > { %v676_v35 = vsel %vm675_vm3, %v674_v33, %v668_v34 }
 0x400   : > { %v672_v36 = vpop.permute.xlu2 %671 }
 0x401   : > { %v678_v37 = vsel %vm677_vm4, %v676_v35, %v672_v36 }
 0x402   : > { %v679_v38 = vpack.c.bf16 %v678_v37, %v678_v37 }
 0x404   : > { %963 = vmatmul.msk.bf16.vlgmr.msra.gmra.mxu1 %vm401_vm0, %v679_v38 }
 0x481   : > { %v708_v39 = vpop.f32.mrf.mxu1 }
 0x482   : > { %v712_v40 = vadd.f32 %v708_v39, %v1146_v2  ;;  %v997_v2 = vld [vmem:[%s1247_s5 + $0x8] sm:$0xff]  ;;  %v1023_v39 = vld [vmem:[%s1251_s9] ss:$0 sm:$0xff] }
 0x483   : > { %782 = vmatpush.bf16.msra.mxu2 %v997_v2 }
 0x484   : > { %v713_v41 = vsel %vm401_vm0, %v712_v40, 0.0 }
 0x485   : > { %714 = vadd.xlane.f32.xlu0 %v713_v41  ;;  %v1024_v41 = vld [vmem:[%s1252_s10] ss:$0 sm:$0xff] }
 0x487   : > { %783 = vmatpush.bf16.msra.mxu2 %v996_v55 }
 0x489   : > { %v710_v42 = vpop.f32.mrf.mxu1 }
 0x4f8   : > { %v715_v50 = vpop.xlane.xlu0 %714 }
 0x4f9   : > { %v723_v51 = vmul.f32 %v722_v49, %v715_v50 }
 0x4fb   : > { %v724_v52 = vsub.f32 %v712_v40, %v723_v51 }
 0x4fd   : > { %v725_v53 = vmul.f32 %v724_v52, %v724_v52 }
 0x4ff   : > { %v726_v54 = vsel %vm401_vm0, %v725_v53, 0.0 }
 0x500   : > { %727 = vadd.xlane.f32.xlu2 %v726_v54 }
 0x573   : > { %v728_v57 = vpop.xlane.xlu2 %727 }
 0x574   : > { %v729_v58 = vmul.f32 %v728_v57, %v722_v49 }
 0x576   : > { %v730_v60 = vadd.f32 1e-05, %v729_v58 }
 0x578   : > { %1043 = vrsqrt.f32 %v730_v60  ;;  %vm737_vm7 = vweird.f32 %v730_v60 }
 0x57e   : > { %v1044_v61 = vpop.eup %1043 }
 0x57f   : > { %v732_v62 = vmul.f32 %v1044_v61, %v730_v60  ;;  %vm738_vm6 = vweird.f32 %v1044_v61 }
 0x580   : > { %vm739_vm8 = vmor %vm737_vm7, %vm738_vm6 }
 0x581   : > { %v733_v63 = vmul.f32 %v1044_v61, %v732_v62 }
 0x583   : > { %v734_v0 = vmul.f32 0.5, %v733_v63 }
 0x585   : > { %v735_v1 = vsub.f32 1.5, %v734_v0 }
 0x587   : > { %v736_v3 = vmul.f32 %v1044_v61, %v735_v1 }
 0x589   : > { %v740_v5 = vsel %vm739_vm8, %v1044_v61, %v736_v3 }
 0x58a   : > { %v741_v7 = vmul.f32 %v740_v5, %v724_v52 }
 0x58c   : > { %v746_v8 = vmul.f32 %v1019_v4, %v741_v7 }
 0x58e   : > { %v751_v9 = vadd.f32 %v1020_v6, %v746_v8 }
 0x590   : > { %v752_v10 = vpack.c.bf16 %v751_v9, %v751_v9 }
 0x592   : > { %972 = vmatmul.msk.bf16.vlgmr.msra.gmra.mxu2 %vm401_vm0, %v752_v10 }
 0x615   : > { %v785_v14 = vpop.f32.mrf.mxu2 }
 0x616   : > { %v786_v15 = vadd.f32 %v1021_v13, %v785_v14 }
 0x618   : > { %v789_v16 = vmax.f32 %v786_v15, 0.0 }
 0x61a   : > { %v790_v17 = vpack.c.bf16 %v789_v16, %v789_v16 }
 0x61c   : > { %989 = vmatmul.msk.bf16.vlgmr.msra.gmra.mxu3 %vm827_vm9, %v790_v17 }
 0x61d   : > { %v787_v18 = vpop.f32.mrf.mxu2 }
 0x69f   : > { %v840_v20 = vpop.f32.mrf.mxu3 }
 0x6a0   : > { %v841_v21 = vadd.f32 %v1022_v19, %v840_v20 }
 0x6a2   : > { %v844_v22 = vadd.f32 %v841_v21, %v751_v9 }
 0x6a4   : > { %v845_v23 = vsel %vm401_vm0, %v844_v22, 0.0 }
 0x6a5   : > { %846 = vadd.xlane.f32.xlu1 %v845_v23 }
 0x6a7   : > { %v842_v24 = vpop.f32.mrf.mxu3 }
 0x718   : > { %v847_v25 = vpop.xlane.xlu1 %846 }
 0x719   : > { %v848_v26 = vmul.f32 %v847_v25, %v722_v49 }
 0x71b   : > { %v849_v27 = vsub.f32 %v844_v22, %v848_v26 }
 0x71d   : > { %v850_v28 = vmul.f32 %v849_v27, %v849_v27 }
 0x71f   : > { %v851_v29 = vsel %vm401_vm0, %v850_v28, 0.0 }
 0x720   : > { %852 = vadd.xlane.f32.xlu1 %v851_v29 }
 0x793   : > { %v853_v30 = vpop.xlane.xlu1 %852 }
 0x794   : > { %v854_v31 = vmul.f32 %v853_v30, %v722_v49 }
 0x796   : > { %v855_v32 = vadd.f32 1e-05, %v854_v31 }
 0x798   : > { %1045 = vrsqrt.f32 %v855_v32  ;;  %vm862_vm11 = vweird.f32 %v855_v32 }
 0x79e   : > { %v1046_v33 = vpop.eup %1045 }
 0x79f   : > { %v857_v34 = vmul.f32 %v1046_v33, %v855_v32  ;;  %vm863_vm10 = vweird.f32 %v1046_v33 }
 0x7a0   : > { %vm864_vm12 = vmor %vm862_vm11, %vm863_vm10 }
 0x7a1   : > { %v858_v35 = vmul.f32 %v1046_v33, %v857_v34 }
 0x7a3   : > { %v859_v36 = vmul.f32 0.5, %v858_v35 }
 0x7a5   : > { %v860_v37 = vsub.f32 1.5, %v859_v36 }
 0x7a7   : > { %v861_v38 = vmul.f32 %v1046_v33, %v860_v37 }
 0x7a9   : > { %v865_v40 = vsel %vm864_vm12, %v1046_v33, %v861_v38 }
 0x7aa   : > { %v866_v42 = vmul.f32 %v865_v40, %v849_v27 }
 0x7ac   : > { %v871_v43 = vmul.f32 %v1023_v39, %v866_v42 }
 0x7ae   : > { %v876_v44 = vadd.f32 %v1024_v41, %v871_v43 }
 0x7b0   : > { %877 = vst.msk [vmem:[%s381_s14] sm:$0xff] %vm401_vm0, %v876_v44 }
 0x7b1 PF: > { %s21_s17 = sadd.s32 1, %s1053_s17  }
 0x7b2   : > { %p18_p4 = scmp.ge.s32.totalorder %s21_s17, 4  }
 0x7b4   :  { %20 = sbr.rel (!%p18_p4) target bundleno = 1 (0x1), region = 94 }

</bundles_post_ra>
